<compile_context>
chip_gen: v7x
topology: tpu7x:2x2x1
jax: 0.10.0
libtpu: 0.0.40
codegen_flags: <defaults>
</compile_context>

<pallas_src>
import functools
from typing import NamedTuple

import jax
import jax.numpy as jnp
from jax.experimental import pallas as pl
from jax.experimental.pallas import tpu as pltpu

_LANE = 128       # lane width (last dim)
_SUBLANE_BF16 = 16  # bf16 sublane packing (second-to-last dim)


# ---------------------------------------------------------------------------
# Helpers
# ---------------------------------------------------------------------------
def _round_up(n, m):
    return ((n + m - 1) // m) * m


def _pad2(a, rows, cols):
    return jnp.pad(a, ((0, rows - a.shape[0]), (0, cols - a.shape[1])))


def _chip_caps():
    """Return (vmem_limit_cap_bytes, lane_multiple_for_wide_layers)."""
    try:
        kind = jax.devices()[0].device_kind.lower()
    except Exception:  # pragma: no cover - defensive
        kind = ""
    if "v6" in kind:
        return 100 * 2**20, 256          # v6e: 128 MiB VMEM, 2x256x256 MXU
    if "v7" in kind or "7x" in kind:
        return 40 * 2**20, 256           # v7x: 64 MiB VMEM/TC, 2x256x256 MXU
    if "v5" in kind or "v4" in kind or "v3" in kind or "v2" in kind:
        return 100 * 2**20, 128          # v5e etc.: 128 MiB VMEM, 128-wide MXU
    return 40 * 2**20, 128               # unknown: be conservative


def _pad_feat(f, lane_mult):
    # Small layers stay at 128 (padding tiny dims to 256 only wastes work);
    # wider layers get the MXU-native multiple for this generation.
    return _round_up(f, 128 if f <= 128 else lane_mult)


# ---------------------------------------------------------------------------
# One-time parameter preparation (hoisted out of the forward call path).
# ---------------------------------------------------------------------------
class PreparedMLP(NamedTuple):
    weights: tuple       # per layer: padded bf16 (K_pad, N_pad), left in HBM
    biases: jnp.ndarray  # packed f32 (n_layers, N_max_pad)
    feat: tuple          # real feature sizes [in, h1, ..., out]
    feat_pad: tuple      # padded feature sizes


def prepare_mlp_params(params, lane_mult=None):
    if lane_mult is None:
        _, lane_mult = _chip_caps()
    feat = [params[0][0].shape[0]] + [w.shape[1] for (w, _) in params]
    feat_pad = [_pad_feat(f, lane_mult) for f in feat]
    n_max = max(feat_pad[1:])

    weights = tuple(
        _pad2(jnp.asarray(w, jnp.float32), feat_pad[i], feat_pad[i + 1]).astype(
            jnp.bfloat16
        )
        for i, (w, _) in enumerate(params)
    )
    b_all = jnp.zeros((len(params), n_max), jnp.float32)
    for i, (_, b) in enumerate(params):
        b_all = b_all.at[i, : b.shape[0]].set(jnp.asarray(b, jnp.float32))

    return PreparedMLP(weights, b_all, tuple(feat), tuple(feat_pad))


# ---------------------------------------------------------------------------
# Fused kernel: all layers in one body; weights streamed HBM->VMEM with a
# manual double buffer so layer i+1's DMA overlaps layer i's matmul.
# ---------------------------------------------------------------------------
def _fused_mlp_kernel(*refs, layer_dims, eps, batch, batch_pad, normal):
    """refs = (x, biases, w_hbm_0..w_hbm_L, out, wbuf0, wbuf1, sem)."""
    n_layers = len(layer_dims)
    x_ref = refs[0]
    b_ref = refs[1]
    w_hbm = refs[2:2 + n_layers]
    o_ref = refs[2 + n_layers]
    wbufs = (refs[3 + n_layers], refs[4 + n_layers])
    sem = refs[5 + n_layers]

    def start_fetch(i):
        slot = i & 1
        kp, np_ = layer_dims[i]
        cp = pltpu.make_async_copy(
            w_hbm[i], wbufs[slot].at[:kp, :np_], sem.at[slot]
        )
        cp.start()
        return cp

    copies = [None] * n_layers
    copies[0] = start_fetch(0)

    x = x_ref[...]                                   # bf16 (B_pad, K0_pad)
    inv_b = 1.0 / float(batch)                       # real (unpadded) batch size
    need_row_mask = batch_pad != batch
    if need_row_mask:
        row_ok = jax.lax.broadcasted_iota(jnp.int32, (batch_pad, 1), 0) < batch

    for i in range(n_layers):
        slot = i & 1
        kp, np_ = layer_dims[i]
        copies[i].wait()                             # weights for layer i ready
        if i + 1 < n_layers:
            copies[i + 1] = start_fetch(i + 1)       # prefetch next layer

        w = wbufs[slot][:kp, :np_]                   # bf16 (K_pad, N_pad)
        b = b_ref[i:i + 1, :np_]                     # f32  (1, N_pad)
        h = jnp.dot(x, w, preferred_element_type=jnp.float32) + b

        if i < n_layers - 1:
            h = jnp.maximum(h, 0.0)                  # ReLU
            if need_row_mask:
                # Zero padded batch rows so BN statistics only see real rows.
                h = jnp.where(row_ok, h, 0.0)
            if normal:
                # One-pass moments: var = E[h^2] - mean^2 (one XLU reduce pass).
                mean = jnp.sum(h, axis=0, keepdims=True) * inv_b
                ex2 = jnp.sum(h * h, axis=0, keepdims=True) * inv_b
                var = jnp.maximum(ex2 - mean * mean, 0.0)
                h = (h - mean) * jax.lax.rsqrt(var + eps)   # rsqrt -> EUP slot
            x = h.astype(jnp.bfloat16)               # bf16 input for next MXU op
        else:
            o_ref[...] = h                           # final Linear, f32 out


# ---------------------------------------------------------------------------
# Forward wrapper: pads only the activations; weights/biases are pre-prepared.
# ---------------------------------------------------------------------------
def mlp_forward(prepared: PreparedMLP, x, dropout=0.0, normal=True, eps=1e-5):
    """Mirrors MLP.forward: x.float(); [Linear, ReLU, (BatchNorm1d)]* ; Linear."""
    if dropout:
        # TODO(synk): dropout > 0 not implemented.
        raise NotImplementedError("dropout > 0 is not implemented")

    x = jnp.asarray(x, jnp.float32)
    batch, in_features = x.shape
    feat, feat_pad = prepared.feat, prepared.feat_pad
    assert in_features == feat[0]
    n_layers = len(prepared.weights)

    batch_pad = _round_up(batch, _SUBLANE_BF16)
    x_pad = _pad2(x, batch_pad, feat_pad[0]).astype(jnp.bfloat16)

    k_max = max(feat_pad[:-1])
    n_max = max(feat_pad[1:])
    layer_dims = tuple((feat_pad[i], feat_pad[i + 1]) for i in range(n_layers))

    # --- VMEM budget, sized per generation and including f32 activation temps.
    vmem_cap, _ = _chip_caps()
    wbuf_bytes = 2 * k_max * n_max * 2                       # 2 bf16 weight slabs
    x_bytes = batch_pad * feat_pad[0] * 2
    bias_bytes = int(prepared.biases.size) * 4
    out_bytes = batch_pad * feat_pad[-1] * 4
    act_bytes = 4 * batch_pad * n_max * 4                    # h, h*h, temporaries
    resident = wbuf_bytes + 2 * (x_bytes + bias_bytes + out_bytes) + act_bytes
    vmem_limit = int(min(vmem_cap, max(8 * 2**20, 2 * resident)))

    # --- advisory cost estimate for XLA's scheduler.
    flops = sum(2 * batch_pad * kp * np_ for (kp, np_) in layer_dims)
    transcendentals = sum(feat_pad[1:-1]) if (normal and n_layers > 1) else 0
    total_bytes = (
        x_bytes
        + bias_bytes
        + out_bytes
        + sum(int(w.size) * 2 for w in prepared.weights)
    )

    kernel = functools.partial(
        _fused_mlp_kernel,
        layer_dims=layer_dims,
        eps=eps,
        batch=batch,
        batch_pad=batch_pad,
        normal=normal,
    )

    in_specs = [
        pl.BlockSpec((batch_pad, feat_pad[0]), lambda: (0, 0)),     # x (VMEM)
        pl.BlockSpec(prepared.biases.shape, lambda: (0, 0)),        # biases (VMEM)
    ] + [pl.BlockSpec(memory_space=pl.ANY)] * n_layers              # weights (HBM)

    out = pl.pallas_call(
        kernel,
        out_shape=jax.ShapeDtypeStruct((batch_pad, feat_pad[-1]), jnp.float32),
        grid=(),
        in_specs=in_specs,
        out_specs=pl.BlockSpec((batch_pad, feat_pad[-1]), lambda: (0, 0)),
        scratch_shapes=[
            pltpu.VMEM((k_max, n_max), jnp.bfloat16),   # weight double buffer 0
            pltpu.VMEM((k_max, n_max), jnp.bfloat16),   # weight double buffer 1
            pltpu.SemaphoreType.DMA((2,)),
        ],
        compiler_params=pltpu.CompilerParams(vmem_limit_bytes=vmem_limit),
        cost_estimate=pl.CostEstimate(
            flops=flops, transcendentals=transcendentals, bytes_accessed=total_bytes
        ),
    )(x_pad, prepared.biases, *prepared.weights)

    return out[:batch, : feat[-1]]


# ---------------------------------------------------------------------------
# Parameter construction (plain JAX) — PyTorch-style uniform(+-1/sqrt(fan_in)).
# Weights stored as (in_features, out_features); biases as (out_features,).
# ---------------------------------------------------------------------------
def init_mlp_params(key, input_size, output_size, hidden_sizes):
    params = []
    sizes = [input_size] + list(hidden_sizes) + [output_size]
    for fan_in, fan_out in zip(sizes[:-1], sizes[1:]):
        key, kw, kb = jax.random.split(key, 3)
        bound = 1.0 / jnp.sqrt(jnp.float32(fan_in))
        w = jax.random.uniform(
            kw, (fan_in, fan_out), jnp.float32, minval=-bound, maxval=bound
        )
        b = jax.random.uniform(
            kb, (fan_out,), jnp.float32, minval=-bound, maxval=bound
        )
        params.append((w, b))
    return params


# ---------------------------------------------------------------------------
# Pure-JAX reference (same dtype strategy: bf16 matmul inputs, f32 accum/BN).
# ---------------------------------------------------------------------------
def mlp_reference(params, x, normal=True, eps=1e-5):
    x = jnp.asarray(x, jnp.float32)
    *hidden, (w_last, b_last) = params
    for w, b in hidden:
        h = (
            jnp.dot(
                x.astype(jnp.bfloat16),
                w.astype(jnp.bfloat16),
                preferred_element_type=jnp.float32,
            )
            + b
        )
        h = jnp.maximum(h, 0.0)
        if normal:
            mean = jnp.mean(h, axis=0, keepdims=True)
            ex2 = jnp.mean(h * h, axis=0, keepdims=True)
            var = jnp.maximum(ex2 - mean * mean, 0.0)
            h = (h - mean) * jax.lax.rsqrt(var + eps)
        x = h
    return (
        jnp.dot(
            x.astype(jnp.bfloat16),
            w_last.astype(jnp.bfloat16),
            preferred_element_type=jnp.float32,
        )
        + b_last
    )


if __name__ == "__main__":
    key = jax.random.PRNGKey(0)
    kparam, kx = jax.random.split(key)

    batch, input_size, output_size = 8, 16, 8
    hidden_sizes = [32, 32]

    params = init_mlp_params(kparam, input_size, output_size, hidden_sizes)
    prepared = prepare_mlp_params(params)          # one-time weight prep
    x = jax.random.normal(kx, (batch, input_size), jnp.float32)

    out = jax.block_until_ready(mlp_forward(prepared, x))
    ref = mlp_reference(params, x)

    assert out.shape == (batch, output_size)
    assert jnp.allclose(out, ref, atol=2e-3, rtol=2e-3), float(
        jnp.max(jnp.abs(out - ref))
    )

    print("KERNEL_OK")
</pallas_src>

<mosaic_0001>
module attributes {stable_mosaic.version = 11 : i64} {
  func.func @_fused_mlp_kernel(%arg0: memref<16x128xbf16, #tpu.memory_space<vmem>>, %arg1: memref<3x128xf32, #tpu.memory_space<vmem>>, %arg2: memref<128x128xbf16, #tpu.memory_space<any>>, %arg3: memref<128x128xbf16, #tpu.memory_space<any>>, %arg4: memref<128x128xbf16, #tpu.memory_space<any>>, %arg5: memref<16x128xf32, #tpu.memory_space<vmem>>, %arg6: memref<128x128xbf16, #tpu.memory_space<vmem>>, %arg7: memref<128x128xbf16, #tpu.memory_space<vmem>>, %arg8: memref<2x!tpu.dma_semaphore, #tpu.memory_space<semaphore_mem>>) attributes {dimension_semantics = [], scalar_prefetch = 0 : i64, scratch_operands = 3 : i64, tpu.core_type = #tpu.core_type<tc>} {
    %c0_i32 = arith.constant 0 : i32
    %c0_i32_0 = arith.constant 0 : i32
    %c0_i32_1 = arith.constant 0 : i32
    %0 = tpu.memref_slice %arg6[%c0_i32_0, %c0_i32_1] : memref<128x128xbf16, #tpu.memory_space<vmem>> -> memref<128x128xbf16, #tpu.memory_space<vmem>>
    %1 = tpu.memref_slice %arg8[%c0_i32] : memref<2x!tpu.dma_semaphore, #tpu.memory_space<semaphore_mem>> -> memref<1x!tpu.dma_semaphore, #tpu.memory_space<semaphore_mem>>
    %2 = tpu.memref_squeeze %1 : memref<1x!tpu.dma_semaphore, #tpu.memory_space<semaphore_mem>> -> memref<!tpu.dma_semaphore, #tpu.memory_space<semaphore_mem>>
    tpu.enqueue_dma source(%arg2 : memref<128x128xbf16, #tpu.memory_space<any>>) target(%0 : memref<128x128xbf16, #tpu.memory_space<vmem>>) target_semaphore(%2 : memref<!tpu.dma_semaphore, #tpu.memory_space<semaphore_mem>>)
    %c0 = arith.constant 0 : index
    %c0_2 = arith.constant 0 : index
    %3 = vector.load %arg0[%c0, %c0_2] : memref<16x128xbf16, #tpu.memory_space<vmem>>, vector<16x128xbf16>
    %4 = tpu.iota {dimensions = array<i32: 0>} : vector<16x1xi32>
    %c8_i32 = arith.constant 8 : i32
    %5 = vector.broadcast %c8_i32 : i32 to vector<16x1xi32>
    %6 = arith.cmpi slt, %4, %5 : vector<16x1xi32>
    %c0_i32_3 = arith.constant 0 : i32
    %c0_i32_4 = arith.constant 0 : i32
    %c0_i32_5 = arith.constant 0 : i32
    %7 = tpu.memref_slice %arg6[%c0_i32_4, %c0_i32_5] : memref<128x128xbf16, #tpu.memory_space<vmem>> -> memref<128x128xbf16, #tpu.memory_space<vmem>>
    %8 = tpu.memref_slice %arg8[%c0_i32_3] : memref<2x!tpu.dma_semaphore, #tpu.memory_space<semaphore_mem>> -> memref<1x!tpu.dma_semaphore, #tpu.memory_space<semaphore_mem>>
    %9 = tpu.memref_squeeze %8 : memref<1x!tpu.dma_semaphore, #tpu.memory_space<semaphore_mem>> -> memref<!tpu.dma_semaphore, #tpu.memory_space<semaphore_mem>>
    tpu.wait_dma2 semaphore(%9 : memref<!tpu.dma_semaphore, #tpu.memory_space<semaphore_mem>>) src(%arg2 : memref<128x128xbf16, #tpu.memory_space<any>>) dst(%7 : memref<128x128xbf16, #tpu.memory_space<vmem>>)
    %c1_i32 = arith.constant 1 : i32
    %c0_i32_6 = arith.constant 0 : i32
    %c0_i32_7 = arith.constant 0 : i32
    %10 = tpu.memref_slice %arg7[%c0_i32_6, %c0_i32_7] : memref<128x128xbf16, #tpu.memory_space<vmem>> -> memref<128x128xbf16, #tpu.memory_space<vmem>>
    %11 = tpu.memref_slice %arg8[%c1_i32] : memref<2x!tpu.dma_semaphore, #tpu.memory_space<semaphore_mem>> -> memref<1x!tpu.dma_semaphore, #tpu.memory_space<semaphore_mem>>
    %12 = tpu.memref_squeeze %11 : memref<1x!tpu.dma_semaphore, #tpu.memory_space<semaphore_mem>> -> memref<!tpu.dma_semaphore, #tpu.memory_space<semaphore_mem>>
    tpu.enqueue_dma source(%arg3 : memref<128x128xbf16, #tpu.memory_space<any>>) target(%10 : memref<128x128xbf16, #tpu.memory_space<vmem>>) target_semaphore(%12 : memref<!tpu.dma_semaphore, #tpu.memory_space<semaphore_mem>>)
    %c0_8 = arith.constant 0 : index
    %c0_9 = arith.constant 0 : index
    %13 = vector.load %arg6[%c0_8, %c0_9] : memref<128x128xbf16, #tpu.memory_space<vmem>>, vector<128x128xbf16>
    %c0_10 = arith.constant 0 : index
    %c0_11 = arith.constant 0 : index
    %14 = vector.load %arg1[%c0_10, %c0_11] : memref<3x128xf32, #tpu.memory_space<vmem>>, vector<1x128xf32>
    %cst = arith.constant dense<0.000000e+00> : vector<16x128xf32>
    %15 = tpu.matmul %3, %13, %cst {dimension_numbers = #tpu.dot_dimension_numbers<[1], [0], [0], [1], [0, 0, 1, 1], [], []>} : vector<16x128xbf16>, vector<128x128xbf16>, vector<16x128xf32> -> vector<16x128xf32>
    %16 = vector.broadcast %14 : vector<1x128xf32> to vector<16x128xf32>
    %17 = arith.addf %15, %16 : vector<16x128xf32>
    %cst_12 = arith.constant 0.000000e+00 : f32
    %18 = vector.broadcast %cst_12 : f32 to vector<16x128xf32>
    %19 = arith.maximumf %17, %18 : vector<16x128xf32>
    %cst_13 = arith.constant 0.000000e+00 : f32
    %20 = vector.shape_cast %6 : vector<16x1xi1> to vector<16x1xi1>
    %21 = vector.broadcast %20 : vector<16x1xi1> to vector<16x128xi1>
    %22 = vector.broadcast %cst_13 : f32 to vector<16x128xf32>
    %23 = arith.select %21, %19, %22 : vector<16x128xi1>, vector<16x128xf32>
    %cst_14 = arith.constant dense<0.000000e+00> : vector<128xf32>
    %24 = vector.multi_reduction <add>, %23, %cst_14 [0] : vector<16x128xf32> to vector<128xf32>
    %25 = vector.shape_cast %24 : vector<128xf32> to vector<1x128xf32>
    %cst_15 = arith.constant 1.250000e-01 : f32
    %26 = vector.broadcast %cst_15 : f32 to vector<1x128xf32>
    %27 = arith.mulf %25, %26 : vector<1x128xf32>
    %28 = arith.mulf %23, %23 : vector<16x128xf32>
    %cst_16 = arith.constant dense<0.000000e+00> : vector<128xf32>
    %29 = vector.multi_reduction <add>, %28, %cst_16 [0] : vector<16x128xf32> to vector<128xf32>
    %30 = vector.shape_cast %29 : vector<128xf32> to vector<1x128xf32>
    %cst_17 = arith.constant 1.250000e-01 : f32
    %31 = vector.broadcast %cst_17 : f32 to vector<1x128xf32>
    %32 = arith.mulf %30, %31 : vector<1x128xf32>
    %33 = arith.mulf %27, %27 : vector<1x128xf32>
    %34 = arith.subf %32, %33 : vector<1x128xf32>
    %cst_18 = arith.constant 0.000000e+00 : f32
    %35 = vector.broadcast %cst_18 : f32 to vector<1x128xf32>
    %36 = arith.maximumf %34, %35 : vector<1x128xf32>
    %37 = vector.broadcast %27 : vector<1x128xf32> to vector<16x128xf32>
    %38 = arith.subf %23, %37 : vector<16x128xf32>
    %cst_19 = arith.constant 9.99999974E-6 : f32
    %39 = vector.broadcast %cst_19 : f32 to vector<1x128xf32>
    %40 = arith.addf %36, %39 : vector<1x128xf32>
    %41 = math.rsqrt %40 : vector<1x128xf32>
    %42 = vector.broadcast %41 : vector<1x128xf32> to vector<16x128xf32>
    %43 = arith.mulf %38, %42 : vector<16x128xf32>
    %44 = arith.truncf %43 : vector<16x128xf32> to vector<16x128xbf16>
    %c1_i32_20 = arith.constant 1 : i32
    %c0_i32_21 = arith.constant 0 : i32
    %c0_i32_22 = arith.constant 0 : i32
    %45 = tpu.memref_slice %arg7[%c0_i32_21, %c0_i32_22] : memref<128x128xbf16, #tpu.memory_space<vmem>> -> memref<128x128xbf16, #tpu.memory_space<vmem>>
    %46 = tpu.memref_slice %arg8[%c1_i32_20] : memref<2x!tpu.dma_semaphore, #tpu.memory_space<semaphore_mem>> -> memref<1x!tpu.dma_semaphore, #tpu.memory_space<semaphore_mem>>
    %47 = tpu.memref_squeeze %46 : memref<1x!tpu.dma_semaphore, #tpu.memory_space<semaphore_mem>> -> memref<!tpu.dma_semaphore, #tpu.memory_space<semaphore_mem>>
    tpu.wait_dma2 semaphore(%47 : memref<!tpu.dma_semaphore, #tpu.memory_space<semaphore_mem>>) src(%arg3 : memref<128x128xbf16, #tpu.memory_space<any>>) dst(%45 : memref<128x128xbf16, #tpu.memory_space<vmem>>)
    %c0_i32_23 = arith.constant 0 : i32
    %c0_i32_24 = arith.constant 0 : i32
    %c0_i32_25 = arith.constant 0 : i32
    %48 = tpu.memref_slice %arg6[%c0_i32_24, %c0_i32_25] : memref<128x128xbf16, #tpu.memory_space<vmem>> -> memref<128x128xbf16, #tpu.memory_space<vmem>>
    %49 = tpu.memref_slice %arg8[%c0_i32_23] : memref<2x!tpu.dma_semaphore, #tpu.memory_space<semaphore_mem>> -> memref<1x!tpu.dma_semaphore, #tpu.memory_space<semaphore_mem>>
    %50 = tpu.memref_squeeze %49 : memref<1x!tpu.dma_semaphore, #tpu.memory_space<semaphore_mem>> -> memref<!tpu.dma_semaphore, #tpu.memory_space<semaphore_mem>>
    tpu.enqueue_dma source(%arg4 : memref<128x128xbf16, #tpu.memory_space<any>>) target(%48 : memref<128x128xbf16, #tpu.memory_space<vmem>>) target_semaphore(%50 : memref<!tpu.dma_semaphore, #tpu.memory_space<semaphore_mem>>)
    %c0_26 = arith.constant 0 : index
    %c0_27 = arith.constant 0 : index
    %51 = vector.load %arg7[%c0_26, %c0_27] : memref<128x128xbf16, #tpu.memory_space<vmem>>, vector<128x128xbf16>
    %c1 = arith.constant 1 : index
    %c0_28 = arith.constant 0 : index
    %52 = vector.load %arg1[%c1, %c0_28] : memref<3x128xf32, #tpu.memory_space<vmem>>, vector<1x128xf32>
    %cst_29 = arith.constant dense<0.000000e+00> : vector<16x128xf32>
    %53 = tpu.matmul %44, %51, %cst_29 {dimension_numbers = #tpu.dot_dimension_numbers<[1], [0], [0], [1], [0, 0, 1, 1], [], []>} : vector<16x128xbf16>, vector<128x128xbf16>, vector<16x128xf32> -> vector<16x128xf32>
    %54 = vector.broadcast %52 : vector<1x128xf32> to vector<16x128xf32>
    %55 = arith.addf %53, %54 : vector<16x128xf32>
    %cst_30 = arith.constant 0.000000e+00 : f32
    %56 = vector.broadcast %cst_30 : f32 to vector<16x128xf32>
    %57 = arith.maximumf %55, %56 : vector<16x128xf32>
    %cst_31 = arith.constant 0.000000e+00 : f32
    %58 = vector.shape_cast %6 : vector<16x1xi1> to vector<16x1xi1>
    %59 = vector.broadcast %58 : vector<16x1xi1> to vector<16x128xi1>
    %60 = vector.broadcast %cst_31 : f32 to vector<16x128xf32>
    %61 = arith.select %59, %57, %60 : vector<16x128xi1>, vector<16x128xf32>
    %cst_32 = arith.constant dense<0.000000e+00> : vector<128xf32>
    %62 = vector.multi_reduction <add>, %61, %cst_32 [0] : vector<16x128xf32> to vector<128xf32>
    %63 = vector.shape_cast %62 : vector<128xf32> to vector<1x128xf32>
    %cst_33 = arith.constant 1.250000e-01 : f32
    %64 = vector.broadcast %cst_33 : f32 to vector<1x128xf32>
    %65 = arith.mulf %63, %64 : vector<1x128xf32>
    %66 = arith.mulf %61, %61 : vector<16x128xf32>
    %cst_34 = arith.constant dense<0.000000e+00> : vector<128xf32>
    %67 = vector.multi_reduction <add>, %66, %cst_34 [0] : vector<16x128xf32> to vector<128xf32>
    %68 = vector.shape_cast %67 : vector<128xf32> to vector<1x128xf32>
    %cst_35 = arith.constant 1.250000e-01 : f32
    %69 = vector.broadcast %cst_35 : f32 to vector<1x128xf32>
    %70 = arith.mulf %68, %69 : vector<1x128xf32>
    %71 = arith.mulf %65, %65 : vector<1x128xf32>
    %72 = arith.subf %70, %71 : vector<1x128xf32>
    %cst_36 = arith.constant 0.000000e+00 : f32
    %73 = vector.broadcast %cst_36 : f32 to vector<1x128xf32>
    %74 = arith.maximumf %72, %73 : vector<1x128xf32>
    %75 = vector.broadcast %65 : vector<1x128xf32> to vector<16x128xf32>
    %76 = arith.subf %61, %75 : vector<16x128xf32>
    %cst_37 = arith.constant 9.99999974E-6 : f32
    %77 = vector.broadcast %cst_37 : f32 to vector<1x128xf32>
    %78 = arith.addf %74, %77 : vector<1x128xf32>
    %79 = math.rsqrt %78 : vector<1x128xf32>
    %80 = vector.broadcast %79 : vector<1x128xf32> to vector<16x128xf32>
    %81 = arith.mulf %76, %80 : vector<16x128xf32>
    %82 = arith.truncf %81 : vector<16x128xf32> to vector<16x128xbf16>
    %c0_i32_38 = arith.constant 0 : i32
    %c0_i32_39 = arith.constant 0 : i32
    %c0_i32_40 = arith.constant 0 : i32
    %83 = tpu.memref_slice %arg6[%c0_i32_39, %c0_i32_40] : memref<128x128xbf16, #tpu.memory_space<vmem>> -> memref<128x128xbf16, #tpu.memory_space<vmem>>
    %84 = tpu.memref_slice %arg8[%c0_i32_38] : memref<2x!tpu.dma_semaphore, #tpu.memory_space<semaphore_mem>> -> memref<1x!tpu.dma_semaphore, #tpu.memory_space<semaphore_mem>>
    %85 = tpu.memref_squeeze %84 : memref<1x!tpu.dma_semaphore, #tpu.memory_space<semaphore_mem>> -> memref<!tpu.dma_semaphore, #tpu.memory_space<semaphore_mem>>
    tpu.wait_dma2 semaphore(%85 : memref<!tpu.dma_semaphore, #tpu.memory_space<semaphore_mem>>) src(%arg4 : memref<128x128xbf16, #tpu.memory_space<any>>) dst(%83 : memref<128x128xbf16, #tpu.memory_space<vmem>>)
    %c0_41 = arith.constant 0 : index
    %c0_42 = arith.constant 0 : index
    %86 = vector.load %arg6[%c0_41, %c0_42] : memref<128x128xbf16, #tpu.memory_space<vmem>>, vector<128x128xbf16>
    %c2 = arith.constant 2 : index
    %c0_43 = arith.constant 0 : index
    %87 = vector.load %arg1[%c2, %c0_43] : memref<3x128xf32, #tpu.memory_space<vmem>>, vector<1x128xf32>
    %cst_44 = arith.constant dense<0.000000e+00> : vector<16x128xf32>
    %88 = tpu.matmul %82, %86, %cst_44 {dimension_numbers = #tpu.dot_dimension_numbers<[1], [0], [0], [1], [0, 0, 1, 1], [], []>} : vector<16x128xbf16>, vector<128x128xbf16>, vector<16x128xf32> -> vector<16x128xf32>
    %89 = vector.broadcast %87 : vector<1x128xf32> to vector<16x128xf32>
    %90 = arith.addf %88, %89 : vector<16x128xf32>
    %c0_45 = arith.constant 0 : index
    %c0_46 = arith.constant 0 : index
    %91 = vector.load %arg5[%c0_45, %c0_46] : memref<16x128xf32, #tpu.memory_space<vmem>>, vector<16x128xf32>
    tpu.vector_store %arg5[%c0_45, %c0_46], %90 {strides = array<i32>} : memref<16x128xf32, #tpu.memory_space<vmem>>, vector<16x128xf32>,
    return
  }
}

</mosaic_0001>

<bundles_post_ra>
// kernel: tpu_custom_call.1
= control target key start
LH: loop header
LB: loop body
LE: loop exit
PB: predicated region body
PF: predicated region fallthrough
CT: control target
= control target key end

     0   :  { %10 = vsyncpa [#allocation6], 0  ;;  %s771_s0 = inlined_call_operand.hbm [shape: bf16[16,128], index: 0, kind: input, shape index: {}]   ;;  %s772_s1 = inlined_call_operand.hbm [shape: f32[3,128], index: 1, kind: input, shape index: {}]   ;;  %s773_s2 = inlined_call_operand.hbm [shape: bf16[128,128], index: 2, kind: input, shape index: {}]   ;;  %s774_s3 = inlined_call_operand.hbm [shape: bf16[128,128], index: 3, kind: input, shape index: {}]   ;;  %s775_s4 = inlined_call_operand.hbm [shape: bf16[128,128], index: 4, kind: input, shape index: {}]   ;;  %s776_s5 = inlined_call_operand.hbm [shape: f32[16,128], index: 5, kind: output, shape index: {}]  }
   0x1   :  { %11 = vsyncpa [#allocation9], 0 }
   0x2   :  { %12 = vsyncpa [#allocation7], 0  ;;  %s612_s18 = smov [#allocation5]   ;;  %s468_s22 = scalar_lea.hbm %s771_s0, 128 }
   0x3   :  { %s18_s19 = sshll.u32 %s612_s18, 4  ;;  %p469_p0 = scmp.ne.s32.totalorder %s771_s0, %s468_s22  ;;  %s19_s19 = int_to_ptr.vmem [resolvable:$true] %s18_s19 }
   0x4   :  { %p472_p1 = scmp.lt.u32.totalorder %s468_s22, %s771_s0 }
   0x6   :  { %p474_p2 = pnand %p472_p1, %p469_p0 }
   0x8   :  { %477 = shalt.err (!%p474_p2)
}
   0x9   :  { %s478_s27 = scalar_lea.vmem %s19_s19, 128  ;;  %p483_p4 = scmp.lt.s32.totalorder %s19_s19, %s19_s19 }
   0xa   :  { %p479_p3 = scmp.ne.s32.totalorder %s19_s19, %s478_s27  ;;  %p484_p5 = scmp.lt.s32.totalorder %s478_s27, %s478_s27 }
   0xc   :  { %p485_p6 = por %p484_p5, %p483_p4 }
   0xe   :  { %p486_p7 = pnand %p485_p6, %p479_p3 }
  0x10   :  { %489 = shalt.err (!%p486_p7)
}
  0x11   :  { %s613_s28 = smov 64   ;;  %s614_s29 = smov 4  }
  0x12   :  { %24 = dma.hbm_to_vmem [thread:$0]  %s771_s0, 128, %s19_s19, [#allocation6], %s613_s28, %s613_s28, %s614_s29  }
  0x13   :  { %s615_s7 = smov [#allocation8]   ;;  %s490_s11 = scalar_lea.hbm %s772_s1, 64 }
  0x14   :  { %s31_s8 = sshll.u32 %s615_s7, 4  ;;  %p491_p8 = scmp.ne.s32.totalorder %s772_s1, %s490_s11  ;;  %s32_s8 = int_to_ptr.vmem [resolvable:$true] %s31_s8 }
  0x15   :  { %p494_p9 = scmp.lt.u32.totalorder %s490_s11, %s772_s1 }
  0x17   :  { %p496_p10 = pnand %p494_p9, %p491_p8 }
  0x19   :  { %499 = shalt.err (!%p496_p10)
}
  0x1a   :  { %s500_s16 = scalar_lea.vmem %s32_s8, 64  ;;  %p505_p12 = scmp.lt.s32.totalorder %s32_s8, %s32_s8 }
  0x1b   :  { %p501_p11 = scmp.ne.s32.totalorder %s32_s8, %s500_s16  ;;  %p506_p13 = scmp.lt.s32.totalorder %s500_s16, %s500_s16 }
  0x1d   :  { %p507_p0 = por %p506_p13, %p505_p12 }
  0x1f   :  { %p508_p1 = pnand %p507_p0, %p501_p11 }
  0x21   :  { %511 = shalt.err (!%p508_p1)
}
  0x22   :  { %34 = dma.hbm_to_vmem [thread:$0]  %s772_s1, 64, %s32_s8, [#allocation9]  }
  0x23   :  { %600 = dma.done.wait [#allocation6], 128  }
  0x24   :  { %601 = vsyncadd [#allocation6], 4294967168 }
  0x25   :  { %602 = dma.done.wait [#allocation9], 64  }
  0x26   :  { %603 = vsyncadd [#allocation9], 4294967232  ;;  %s616_s18 = smov [#allocation2]   ;;  %s512_s22 = scalar_lea.hbm %s773_s2, 1024 }
  0x27   :  { %s49_s19 = sshll.u32 %s616_s18, 4  ;;  %p513_p2 = scmp.ne.s32.totalorder %s773_s2, %s512_s22  ;;  %s677_s19 = int_to_ptr.vmem [resolvable:$true] %s49_s19 }
  0x28   :  { %p516_p3 = scmp.lt.u32.totalorder %s512_s22, %s773_s2 }
  0x2a   :  { %p518_p4 = pnand %p516_p3, %p513_p2 }
  0x2c   :  { %521 = shalt.err (!%p518_p4)  }
  0x2d   :  { %s522_s1 = scalar_lea.vmem %s677_s19, 1024  ;;  %p527_p6 = scmp.lt.s32.totalorder %s677_s19, %s677_s19 }
  0x2e   :  { %p523_p5 = scmp.ne.s32.totalorder %s677_s19, %s522_s1  ;;  %p528_p7 = scmp.lt.s32.totalorder %s522_s1, %s522_s1 }
  0x30   :  { %p529_p8 = por %p528_p7, %p527_p6 }
  0x32   :  { %p692_p9 = pnand %p529_p8, %p523_p5 }
  0x34   :  { %533 = shalt.err (!%p692_p9)  }
  0x35   :  { %52 = dma.hbm_to_vmem [thread:$0]  %s773_s2, 1024, %s677_s19, [#allocation4]  ;;  %v53_v0 = vld [vmem:[#allocation5] sm:$0xf]  ;;  %v54_v1 = vld [vmem:[#allocation5 + $0x4] sm:$0xf] }
  0x36   :  { %604 = dma.done.wait [#allocation4], 1024 }
  0x37   :  { %605 = vsyncadd [#allocation4], 4294966272  ;;  %v617_v2 = vmov 0.0   ;;  %vm618_vm0 = vmmov 0   ;;  %v76_v3 = vld [vmem:[#allocation2] sm:$0xff]  ;;  %v77_v4 = vld [vmem:[#allocation2 + $0x8] sm:$0xff]  ;;  %v361_v11 = vcombine.low %v53_v0, %v54_v1 }
  0x38   :  { %393 = vmatprep.subr.bf16.mxu0 %v617_v2  ;;  %409 = vmatprep.mubr.msk.bf16.mxu0 %vm618_vm0, %v617_v2  ;;  %v78_v5 = vld [vmem:[#allocation2 + $0x10] sm:$0xff]  ;;  %v79_v6 = vld [vmem:[#allocation2 + $0x18] sm:$0xff]  ;;  %v80_v7 = vld [vmem:[#allocation2 + $0x20] sm:$0xff]  ;;  %s619_s2 = smov [#allocation3]   ;;  %s534_s8 = scalar_lea.hbm %s774_s3, 1024 }
  0x39   :  { %394 = vmatpush3.bf16.msra.mxu0 %v76_v3  ;;  %v81_v8 = vld [vmem:[#allocation2 + $0x28] sm:$0xff]  ;;  %v82_v9 = vld [vmem:[#allocation2 + $0x30] sm:$0xff]  ;;  %v83_v10 = vld [vmem:[#allocation2 + $0x38] sm:$0xff]  ;;  %s72_s30 = sshll.u32 %s619_s2, 4  ;;  %p535_p10 = scmp.ne.s32.totalorder %s774_s3, %s534_s8  ;;  %s73_s30 = int_to_ptr.vmem [resolvable:$true] %s72_s30 }
  0x3a   :  { %395 = vmatprep.subr.bf16.mxu0 %v617_v2  ;;  %p538_p11 = scmp.lt.u32.totalorder %s534_s8, %s774_s3 }
  0x3c   :  { %p540_p12 = pnand %p538_p11, %p535_p10 }
  0x3d   :  { %396 = vmatpush3.bf16.msra.mxu0 %v77_v4 }
  0x3e   :  { %397 = vmatprep.subr.bf16.mxu0 %v617_v2 }
  0x41   :  { %398 = vmatpush3.bf16.msra.mxu0 %v78_v5 }
  0x42   :  { %399 = vmatprep.subr.bf16.mxu0 %v617_v2 }
  0x45   :  { %400 = vmatpush3.bf16.msra.mxu0 %v79_v6 }
  0x46   :  { %401 = vmatprep.subr.bf16.mxu0 %v617_v2 }
  0x49   :  { %402 = vmatpush3.bf16.msra.mxu0 %v80_v7 }
  0x4a   :  { %403 = vmatprep.subr.bf16.mxu0 %v617_v2 }
  0x4d   :  { %404 = vmatpush3.bf16.msra.mxu0 %v81_v8 }
  0x4e   :  { %405 = vmatprep.subr.bf16.mxu0 %v617_v2 }
  0x51   :  { %406 = vmatpush3.bf16.msra.mxu0 %v82_v9 }
  0x52   :  { %407 = vmatprep.subr.bf16.mxu0 %v617_v2 }
  0x55   :  { %408 = vmatpush3.bf16.msra.mxu0 %v83_v10 }
  0x58   :  { %410 = vmatmul.mubr.bf16.vlgmr.msra.gmra.mrb[0].mxu0 %v361_v11 }
  0x59   :  { %543 = shalt.err (!%p540_p12)  }
  0x5a   :  { %s544_s13 = scalar_lea.vmem %s73_s30, 1024  ;;  %p549_p0 = scmp.lt.s32.totalorder %s73_s30, %s73_s30 }
  0x5b   :  { %p545_p13 = scmp.ne.s32.totalorder %s73_s30, %s544_s13  ;;  %p550_p1 = scmp.lt.s32.totalorder %s544_s13, %s544_s13 }
  0x5d   :  { %p551_p2 = por %p550_p1, %p549_p0 }
  0x5f   :  { %p552_p3 = pnand %p551_p2, %p545_p13 }
  0x61   :  { %555 = shalt.err (!%p552_p3)  }
  0x62   :  { %75 = dma.hbm_to_vmem [thread:$0]  %s774_s3, 1024, %s73_s30, [#allocation4 + $0x1]  ;;  %v360_v12 = vld [vmem:[#allocation8] ss:$0 sm:$0xff] }
 0x12b   :  { %v129_v13 = vpop.f32.mrb[0].mxu0 }
 0x12c   :  { %v130_v14 = vadd.f32 %v360_v12, %v129_v13  ;;  %v411_v15 = vpop.f32.mrb[1].mxu0 }
 0x12d   :  { %v132_v16 = vpop.f32.mrb[2].mxu0 }
 0x12e   :  { %v136_v17 = vmax.f32 %v130_v14, 0.0  ;;  %v412_v18 = vpop.f32.mrb[3].mxu0 }
 0x130   :  { %v145_v19 = vrot.slane %v136_v17, 4  ;;  %v152_v20 = vmul.f32 %v136_v17, %v136_v17 }
 0x132   :  { %v146_v21 = vadd.f32 %v145_v19, %v136_v17  ;;  %v155_v22 = vrot.slane %v152_v20, 4 }
 0x134   :  { %v147_v23 = vrot.slane %v146_v21, 2  ;;  %v156_v24 = vadd.f32 %v155_v22, %v152_v20 }
 0x136   :  { %v148_v25 = vadd.f32 %v147_v23, %v146_v21  ;;  %v157_v26 = vrot.slane %v156_v24, 2 }
 0x138   :  { %v149_v27 = vrot.slane %v148_v25, 1  ;;  %v158_v28 = vadd.f32 %v157_v26, %v156_v24 }
 0x13a   :  { %v150_v29 = vadd.f32 %v149_v27, %v148_v25  ;;  %v159_v30 = vrot.slane %v158_v28, 1 }
 0x13c   :  { %v151_v31 = vmul.f32 0.125, %v150_v29  ;;  %v160_v32 = vadd.f32 %v159_v30, %v158_v28 }
 0x13e   :  { %v161_v33 = vmul.f32 0.125, %v160_v32  ;;  %v162_v34 = vmul.f32 %v151_v31, %v151_v31  ;;  %v165_v38 = vsub.f32 %v136_v17, %v151_v31  ;;  %v166_v39 = vsub.f32 0.0, %v151_v31 }
 0x140   :  { %v163_v35 = vsub.f32 %v161_v33, %v162_v34 }
 0x142   :  { %v164_v36 = vmax.f32 %v163_v35, 0.0 }
 0x144   :  { %v167_v37 = vadd.f32 1e-05, %v164_v36 }
 0x146   :  { %464 = vrsqrt.f32 %v167_v37 }
 0x150   :  { %v465_v40 = vpop.eup %464 }
 0x151   :  { %v169_v41 = vmul.f32 %v465_v40, %v165_v38  ;;  %v170_v42 = vmul.f32 %v465_v40, %v166_v39 }
 0x153   :  { %v171_v43 = vpack.c.bf16 %v170_v42, %v169_v41 }
 0x154   :  { %606 = dma.done.wait [#allocation4 + $0x1], 1024 }
 0x155   :  { %607 = vsyncadd [#allocation4 + $0x1], 4294966272  ;;  %413 = vmatprep.subr.bf16.mxu1 %v617_v2  ;;  %429 = vmatprep.mubr.msk.bf16.mxu1 %vm618_vm0, %v617_v2  ;;  %s556_s0 = scalar_lea.hbm %s775_s4, 1024 }
 0x156   :  { %p557_p4 = scmp.ne.s32.totalorder %s775_s4, %s556_s0  ;;  %p560_p5 = scmp.lt.u32.totalorder %s556_s0, %s775_s4 }
 0x158   :  { %p562_p6 = pnand %p560_p5, %p557_p4 }
 0x15a   :  { %565 = shalt.err (!%p562_p6)  }
 0x15b   :  { %577 = shalt.err (!%p692_p9)  }
 0x15c   :  { %184 = dma.hbm_to_vmem [thread:$0]  %s775_s4, 1024, %s677_s19, [#allocation4]  ;;  %v185_v44 = vld [vmem:[#allocation3] sm:$0xff]  ;;  %v186_v45 = vld [vmem:[#allocation3 + $0x8] sm:$0xff]  ;;  %v187_v46 = vld [vmem:[#allocation3 + $0x10] sm:$0xff] }
 0x15d   :  { %414 = vmatpush3.bf16.msra.mxu1 %v185_v44  ;;  %v188_v47 = vld [vmem:[#allocation3 + $0x18] sm:$0xff]  ;;  %v189_v48 = vld [vmem:[#allocation3 + $0x20] sm:$0xff]  ;;  %v190_v49 = vld [vmem:[#allocation3 + $0x28] sm:$0xff] }
 0x15e   :  { %415 = vmatprep.subr.bf16.mxu1 %v617_v2  ;;  %v191_v50 = vld [vmem:[#allocation3 + $0x30] sm:$0xff]  ;;  %v192_v51 = vld [vmem:[#allocation3 + $0x38] sm:$0xff]  ;;  %v362_v52 = vld [vmem:[#allocation8 + $0x1] ss:$0 sm:$0xff] }
 0x161   :  { %416 = vmatpush3.bf16.msra.mxu1 %v186_v45 }
 0x162   :  { %417 = vmatprep.subr.bf16.mxu1 %v617_v2 }
 0x165   :  { %418 = vmatpush3.bf16.msra.mxu1 %v187_v46 }
 0x166   :  { %419 = vmatprep.subr.bf16.mxu1 %v617_v2 }
 0x169   :  { %420 = vmatpush3.bf16.msra.mxu1 %v188_v47 }
 0x16a   :  { %421 = vmatprep.subr.bf16.mxu1 %v617_v2 }
 0x16d   :  { %422 = vmatpush3.bf16.msra.mxu1 %v189_v48 }
 0x16e   :  { %423 = vmatprep.subr.bf16.mxu1 %v617_v2 }
 0x171   :  { %424 = vmatpush3.bf16.msra.mxu1 %v190_v49 }
 0x172   :  { %425 = vmatprep.subr.bf16.mxu1 %v617_v2 }
 0x175   :  { %426 = vmatpush3.bf16.msra.mxu1 %v191_v50 }
 0x176   :  { %427 = vmatprep.subr.bf16.mxu1 %v617_v2 }
 0x179   :  { %428 = vmatpush3.bf16.msra.mxu1 %v192_v51 }
 0x17c   :  { %430 = vmatmul.mubr.bf16.vlgmr.msra.gmra.mrb[0].mxu1 %v171_v43 }
 0x24f   :  { %v232_v53 = vpop.f32.mrb[0].mxu1 }
 0x250   :  { %v233_v54 = vadd.f32 %v362_v52, %v232_v53  ;;  %v431_v55 = vpop.f32.mrb[1].mxu1 }
 0x251   :  { %v235_v56 = vpop.f32.mrb[2].mxu1 }
 0x252   :  { %v239_v57 = vmax.f32 %v233_v54, 0.0  ;;  %v432_v58 = vpop.f32.mrb[3].mxu1 }
 0x254   :  { %v244_v59 = vrot.slane %v239_v57, 4  ;;  %v251_v60 = vmul.f32 %v239_v57, %v239_v57 }
 0x256   :  { %v245_v61 = vadd.f32 %v244_v59, %v239_v57  ;;  %v254_v62 = vrot.slane %v251_v60, 4 }
 0x258   :  { %v246_v63 = vrot.slane %v245_v61, 2  ;;  %v255_v0 = vadd.f32 %v254_v62, %v251_v60 }
 0x25a   :  { %v247_v1 = vadd.f32 %v246_v63, %v245_v61  ;;  %v256_v3 = vrot.slane %v255_v0, 2 }
 0x25c   :  { %v248_v4 = vrot.slane %v247_v1, 1  ;;  %v257_v5 = vadd.f32 %v256_v3, %v255_v0 }
 0x25e   :  { %v249_v6 = vadd.f32 %v248_v4, %v247_v1  ;;  %v258_v7 = vrot.slane %v257_v5, 1 }
 0x260   :  { %v250_v8 = vmul.f32 0.125, %v249_v6  ;;  %v259_v9 = vadd.f32 %v258_v7, %v257_v5 }
 0x262   :  { %v260_v10 = vmul.f32 0.125, %v259_v9  ;;  %v261_v11 = vmul.f32 %v250_v8, %v250_v8  ;;  %v264_v15 = vsub.f32 %v239_v57, %v250_v8  ;;  %v265_v16 = vsub.f32 0.0, %v250_v8 }
 0x264   :  { %v262_v12 = vsub.f32 %v260_v10, %v261_v11 }
 0x266   :  { %v263_v13 = vmax.f32 %v262_v12, 0.0 }
 0x268   :  { %v266_v14 = vadd.f32 1e-05, %v263_v13 }
 0x26a   :  { %466 = vrsqrt.f32 %v266_v14 }
 0x274   :  { %v467_v17 = vpop.eup %466 }
 0x275   :  { %v268_v18 = vmul.f32 %v467_v17, %v264_v15  ;;  %v269_v19 = vmul.f32 %v467_v17, %v265_v16 }
 0x277   :  { %v270_v20 = vpack.c.bf16 %v269_v19, %v268_v18 }
 0x278   :  { %608 = dma.done.wait [#allocation4], 1024 }
 0x279   :  { %609 = vsyncadd [#allocation4], 4294966272  ;;  %433 = vmatprep.subr.bf16.mxu0 %v617_v2  ;;  %449 = vmatprep.mubr.msk.bf16.mxu0 %vm618_vm0, %v617_v2  ;;  %v273_v21 = vld [vmem:[#allocation2] sm:$0xff]  ;;  %v274_v22 = vld [vmem:[#allocation2 + $0x8] sm:$0xff]  ;;  %s620_s4 = smov [#allocation10]  }
 0x27a   :  { %434 = vmatpush3.bf16.msra.mxu0 %v273_v21  ;;  %v275_v23 = vld [vmem:[#allocation2 + $0x10] sm:$0xff]  ;;  %v276_v24 = vld [vmem:[#allocation2 + $0x18] sm:$0xff]  ;;  %v277_v25 = vld [vmem:[#allocation2 + $0x20] sm:$0xff]  ;;  %s334_s19 = sshll.u32 %s620_s4, 4  ;;  %s335_s19 = int_to_ptr.vmem [resolvable:$true] %s334_s19 }
 0x27b   :  { %435 = vmatprep.subr.bf16.mxu0 %v617_v2  ;;  %v278_v26 = vld [vmem:[#allocation2 + $0x28] sm:$0xff]  ;;  %v279_v27 = vld [vmem:[#allocation2 + $0x30] sm:$0xff]  ;;  %v280_v28 = vld [vmem:[#allocation2 + $0x38] sm:$0xff]  ;;  %s578_s24 = scalar_lea.vmem %s335_s19, 256  ;;  %p583_p8 = scmp.lt.s32.totalorder %s335_s19, %s335_s19 }
 0x27c   :  { %v363_v29 = vld [vmem:[#allocation8 + $0x2] ss:$0 sm:$0xff]  ;;  %p579_p7 = scmp.ne.s32.totalorder %s335_s19, %s578_s24  ;;  %p584_p9 = scmp.lt.s32.totalorder %s578_s24, %s578_s24 }
 0x27e   :  { %436 = vmatpush3.bf16.msra.mxu0 %v274_v22  ;;  %p585_p10 = por %p584_p9, %p583_p8 }
 0x27f   :  { %437 = vmatprep.subr.bf16.mxu0 %v617_v2 }
 0x280   :  { %p586_p11 = pnand %p585_p10, %p579_p7 }
 0x282   :  { %438 = vmatpush3.bf16.msra.mxu0 %v275_v23 }
 0x283   :  { %439 = vmatprep.subr.bf16.mxu0 %v617_v2 }
 0x286   :  { %440 = vmatpush3.bf16.msra.mxu0 %v276_v24 }
 0x287   :  { %441 = vmatprep.subr.bf16.mxu0 %v617_v2 }
 0x28a   :  { %442 = vmatpush3.bf16.msra.mxu0 %v277_v25 }
 0x28b   :  { %443 = vmatprep.subr.bf16.mxu0 %v617_v2 }
 0x28e   :  { %444 = vmatpush3.bf16.msra.mxu0 %v278_v26 }
 0x28f   :  { %445 = vmatprep.subr.bf16.mxu0 %v617_v2 }
 0x292   :  { %446 = vmatpush3.bf16.msra.mxu0 %v279_v27 }
 0x293   :  { %447 = vmatprep.subr.bf16.mxu0 %v617_v2 }
 0x296   :  { %448 = vmatpush3.bf16.msra.mxu0 %v280_v28 }
 0x299   :  { %450 = vmatmul.mubr.bf16.vlgmr.msra.gmra.mrb[4].mxu0 %v270_v20 }
 0x36c   :  { %v320_v30 = vpop.f32.mrb[4].mxu0 }
 0x36d   :  { %v321_v31 = vadd.f32 %v363_v29, %v320_v30  ;;  %v451_v32 = vpop.f32.mrb[5].mxu0 }
 0x36e   :  { %v323_v33 = vpop.f32.mrb[6].mxu0 }
 0x36f   :  { %327 = vst [vmem:[#allocation10] sm:$0xff] %v321_v31  ;;  %v324_v34 = vadd.f32 %v363_v29, %v323_v33  ;;  %v452_v35 = vpop.f32.mrb[7].mxu0 }
 0x371   :  { %328 = vst [vmem:[#allocation10 + $0x8] sm:$0xff] %v324_v34 }
 0x372   :  { %589 = shalt.err (!%p586_p11)
}
 0x373   :  { %s590_s1 = scalar_lea.hbm %s776_s5, 256 }
 0x374   :  { %p591_p12 = scmp.ne.s32.totalorder %s776_s5, %s590_s1  ;;  %p594_p13 = scmp.lt.u32.totalorder %s590_s1, %s776_s5 }
 0x376   :  { %p596_p0 = pnand %p594_p13, %p591_p12 }
 0x378   :  { %599 = shalt.err (!%p596_p0)
}
 0x379   :  { %s621_s30 = smov 128   ;;  %s622_s6 = smov 8  }
 0x37a   :  { %340 = dma.vmem_to_hbm [thread:$0]  %s335_s19, 256, %s776_s5, [#allocation7], %s621_s30, %s621_s30, %s622_s6  }
 0x37b   :  { %610 = dma.done.wait [#allocation7], 256  }
 0x37c   :  { %611 = vsyncadd [#allocation7], 4294967040 }
 0x37d   :  { %344 = vsyncpa [#allocation6], 1 }
 0x37e   :  { %345 = vsyncpa [#allocation9], 1 }
 0x37f   :  { %346 = vsyncpa [#allocation7], 1 }
 0x380   :  { %347 = vsyncmov [#allocation4] }
 0x383   :  { %s348_s9 = vpop.sfrf %347 }
 0x384   :  { %p364_p1 = scmp.ne.s32.totalorder %s348_s9, 0 }
 0x386   :  { %352 = shalt.err (%p364_p1)  }
 0x387   :  { %354 = vsyncmov [#allocation4 + $0x1] }
 0x38a   :  { %s355_s10 = vpop.sfrf %354 }
 0x38b   :  { %p365_p2 = scmp.ne.s32.totalorder %s355_s10, 0 }
 0x38d   :  { %359 = shalt.err (%p365_p2)  }

</bundles_post_ra>
